<compile_context>
chip_gen: v7x
topology: tpu7x:2x2x1
jax: 0.10.0
libtpu: 0.0.40
codegen_flags: <defaults>
</compile_context>

<pallas_src>
import functools

import jax
import jax.numpy as jnp
from jax.experimental import pallas as pl
from jax.experimental.pallas import tpu as pltpu


def _round_up(v, m):
    return (v + m - 1) // m * m


def gin_fused_kernel(a_ref, x0_ref, w_ref, b_ref, eps_ref, o_ref, *, num_layers):
    """All-layers GIN forward. Everything is resident in VMEM (SMEM for eps)."""
    a = a_ref[...]                         # (Np, Np) bf16 mean-normalized adjacency
    x = x0_ref[...]                        # (Np, Cp) bf16 running node features

    # num_layers is a static Python int -> fully unrolled layer loop.
    for l in range(num_layers):
        widx = min(l, 1)                   # layer 0 -> lin1, layers 1..L-1 -> shared lin2
        # z = x @ W_l   (bf16 x bf16 -> f32 accumulation on the MXU)
        z = jnp.dot(x, w_ref[widx], preferred_element_type=jnp.float32)
        # agg = A_norm @ z
        agg = jnp.dot(a, z.astype(jnp.bfloat16), preferred_element_type=jnp.float32)
        eps = eps_ref[l]                   # scalar read from SMEM
        y = (1.0 + eps) * z + agg + b_ref[widx]          # (Np, Cp) f32

        if l < num_layers - 1:
            # Hidden layers: ReLU, keep running features in bf16.
            # TODO(synk): F.dropout(training=True) omitted; eval-mode (identity).
            x = jnp.maximum(y, 0.0).astype(jnp.bfloat16)
        else:
            # Last layer: no ReLU; single writeback of the resident output block.
            o_ref[...] = y


def gin_forward(a, deg, emb, w1, b1, w2, b2, epss, *, in_channels, hidden_channels):
    """Fused GIN forward.

    a:    (N, N) f32 dense weighted adjacency, a[i, j] = weight of edge j -> i
    deg:  (N, 1) f32 in-degree edge counts (for the 'mean' aggregator)
    emb:  (N, in_channels) f32 node embeddings (nn.Embedding weight)
    w1:   (in_channels, hidden_channels) f32  lin1 weight (stored [C_in, C_out])
    b1:   (hidden_channels,) f32              lin1 bias
    w2:   (hidden_channels, hidden_channels)  lin2 weight, SHARED by layers 1..L-1
    b2:   (hidden_channels,) f32              lin2 bias
    epss: list of L scalars (learnable GIN eps per layer)
    """
    n = a.shape[0]
    num_layers = len(epss)

    # Lane-dense padding: channels and nodes to multiples of 128 (use 256 on
    # v6e/v7x for large graphs if you want fuller 256x256 MXU tiles).
    c_pad = max(_round_up(in_channels, 128), _round_up(hidden_channels, 128))
    n_pad = _round_up(n, 128)

    # 'mean' aggregator: normalize A by 1/max(indeg, 1) once (constant across
    # layers); bf16 for halved VMEM footprint, f32 accumulation on the MXU.
    a_norm = a / jnp.maximum(deg, 1.0)
    a_pad = (jnp.zeros((n_pad, n_pad), jnp.float32)
             .at[:n, :n].set(a_norm)).astype(jnp.bfloat16)

    # Padded rows/channels of x0 are zero; padded A rows/cols are zero, so any
    # bias/ReLU garbage accumulating in padded rows cannot leak into real rows.
    x0 = (jnp.zeros((n_pad, c_pad), jnp.float32)
          .at[:n, :in_channels].set(emb)).astype(jnp.bfloat16)

    # Deduped weight stack: [lin1, lin2]; layers 1..L-1 all reuse index 1.
    w_stack = jnp.zeros((2, c_pad, c_pad), jnp.float32)
    w_stack = w_stack.at[0, :in_channels, :hidden_channels].set(w1)
    w_stack = w_stack.at[1, :hidden_channels, :hidden_channels].set(w2)
    w_stack = w_stack.astype(jnp.bfloat16)

    b_stack = jnp.zeros((2, 1, c_pad), jnp.float32)
    b_stack = b_stack.at[0, 0, :hidden_channels].set(jnp.reshape(b1, (-1,)))
    b_stack = b_stack.at[1, 0, :hidden_channels].set(jnp.reshape(b2, (-1,)))

    eps_arr = jnp.asarray(epss, jnp.float32).reshape(num_layers)

    # Advisory cost + explicit VMEM budget (default scoped limit can be low).
    flops = 2 * num_layers * (n_pad * n_pad * c_pad + n_pad * c_pad * c_pad)
    bytes_accessed = (a_pad.size * 2 + x0.size * 2 + w_stack.size * 2
                      + b_stack.size * 4 + num_layers * 4 + n_pad * c_pad * 4)
    vmem_needed = bytes_accessed + 4 * n_pad * c_pad * 4    # headroom for temporaries
    vmem_limit = int(min(100 * 2**20, max(32 * 2**20, 4 * vmem_needed)))

    kernel = functools.partial(gin_fused_kernel, num_layers=num_layers)

    out = pl.pallas_call(
        kernel,
        out_shape=jax.ShapeDtypeStruct((n_pad, c_pad), jnp.float32),
        in_specs=[
            pl.BlockSpec(memory_space=pltpu.MemorySpace.VMEM),   # A_norm (bf16), resident
            pl.BlockSpec(memory_space=pltpu.MemorySpace.VMEM),   # x0 (bf16), resident
            pl.BlockSpec(memory_space=pltpu.MemorySpace.VMEM),   # W stack [lin1, lin2] (bf16)
            pl.BlockSpec(memory_space=pltpu.MemorySpace.VMEM),   # bias stack (f32)
            pl.BlockSpec(memory_space=pltpu.MemorySpace.SMEM),   # eps (L,) scalars
        ],
        out_specs=pl.BlockSpec(memory_space=pltpu.MemorySpace.VMEM),
        compiler_params=pltpu.CompilerParams(vmem_limit_bytes=vmem_limit),
        cost_estimate=pl.CostEstimate(flops=int(flops), transcendentals=0,
                                      bytes_accessed=int(bytes_accessed)),
    )(a_pad, x0, w_stack, b_stack, eps_arr)

    out = out[:n, :hidden_channels]
    # x[0] = zeros(x.shape[1])  (matches the PyTorch in-place write)
    out = out.at[0].set(jnp.zeros((hidden_channels,), out.dtype))
    return out


def gin_reference(a, deg, emb, weights, biases, epss):
    """Plain-JAX f32 reference with the original (un-restructured) math."""
    x = emb
    num_layers = len(weights)
    for l in range(num_layers):
        agg = (a @ x) / jnp.maximum(deg, 1.0)
        h = (1.0 + epss[l]) * x + agg
        y = h @ weights[l] + biases[l][None, :]
        if l < num_layers - 1:
            y = jnp.maximum(y, 0.0)
        x = y
    x = x.at[0].set(jnp.zeros((x.shape[1],), x.dtype))
    return x


if __name__ == "__main__":
    key = jax.random.PRNGKey(0)

    # Small synthetic shapes consistent with the module.
    N = 64                 # adj.num_nodes()
    in_channels = 32
    hidden_channels = 32
    num_layers = 3

    k_emb, k_mask, k_w, k_l1, k_l2 = jax.random.split(key, 5)

    # nn.Embedding(adj.num_nodes(), in_channels) weight -> node features
    emb = jax.random.normal(k_emb, (N, in_channels), dtype=jnp.float32)

    # Deterministic random weighted graph: A[i, j] = w(j -> i) or 0.
    mask = (jax.random.uniform(k_mask, (N, N)) < 0.15).astype(jnp.float32)
    edge_w = jax.random.uniform(k_w, (N, N), minval=0.1, maxval=1.0,
                                dtype=jnp.float32)
    a = mask * edge_w
    deg = jnp.sum(mask, axis=1, keepdims=True)       # (N, 1) in-degree edge counts

    def linear_init(k, din, dout):
        kw, kb = jax.random.split(k)
        bound = 1.0 / (din ** 0.5)
        w = jax.random.uniform(kw, (din, dout), jnp.float32, -bound, bound)
        b = jax.random.uniform(kb, (dout,), jnp.float32, -bound, bound)
        return w, b

    # lin1: in -> hidden ; lin2: hidden -> hidden, SHARED by layers 1..L-1
    # (the PyTorch code appends the same `lin2` module repeatedly).
    w1, b1 = linear_init(k_l1, in_channels, hidden_channels)
    w2, b2 = linear_init(k_l2, hidden_channels, hidden_channels)
    eps0 = jnp.float32(0.0)                          # DGL GINConv init_eps = 0
    epss = [eps0] * num_layers

    out = gin_forward(a, deg, emb, w1, b1, w2, b2, epss,
                      in_channels=in_channels, hidden_channels=hidden_channels)
    out = jax.block_until_ready(out)

    weights = [w1] + [w2] * (num_layers - 1)
    biases = [b1] + [b2] * (num_layers - 1)
    ref = gin_reference(a, deg, emb, weights, biases, epss)

    assert out.shape == (N, hidden_channels)
    assert out.dtype == jnp.float32
    assert float(jnp.abs(out[0]).sum()) == 0.0       # x[0] zeroed
    max_err = float(jnp.max(jnp.abs(out - ref)))
    assert max_err < 1e-1, f"max abs error vs f32 reference: {max_err}"
    print("KERNEL_OK")
</pallas_src>

<mosaic_0001>
module attributes {stable_mosaic.version = 11 : i64} {
  func.func @gin_fused_kernel(%arg0: memref<128x128xbf16, #tpu.memory_space<vmem>>, %arg1: memref<128x128xbf16, #tpu.memory_space<vmem>>, %arg2: memref<2x128x128xbf16, #tpu.memory_space<vmem>>, %arg3: memref<2x1x128xf32, #tpu.memory_space<vmem>>, %arg4: memref<3xf32, #tpu.memory_space<smem>>, %arg5: memref<128x128xf32, #tpu.memory_space<vmem>>) attributes {dimension_semantics = [], scalar_prefetch = 0 : i64, scratch_operands = 0 : i64, tpu.core_type = #tpu.core_type<tc>} {
    %c0 = arith.constant 0 : index
    %c0_0 = arith.constant 0 : index
    %0 = vector.load %arg0[%c0, %c0_0] : memref<128x128xbf16, #tpu.memory_space<vmem>>, vector<128x128xbf16>
    %c0_1 = arith.constant 0 : index
    %c0_2 = arith.constant 0 : index
    %1 = vector.load %arg1[%c0_1, %c0_2] : memref<128x128xbf16, #tpu.memory_space<vmem>>, vector<128x128xbf16>
    %c0_3 = arith.constant 0 : index
    %c0_4 = arith.constant 0 : index
    %c0_5 = arith.constant 0 : index
    %2 = vector.load %arg2[%c0_3, %c0_4, %c0_5] : memref<2x128x128xbf16, #tpu.memory_space<vmem>>, vector<1x128x128xbf16>
    %3 = vector.shape_cast %2 : vector<1x128x128xbf16> to vector<128x128xbf16>
    %cst = arith.constant dense<0.000000e+00> : vector<128x128xf32>
    %4 = tpu.matmul %1, %3, %cst {dimension_numbers = #tpu.dot_dimension_numbers<[1], [0], [0], [1], [0, 0, 1, 1], [], []>} : vector<128x128xbf16>, vector<128x128xbf16>, vector<128x128xf32> -> vector<128x128xf32>
    %5 = arith.truncf %4 : vector<128x128xf32> to vector<128x128xbf16>
    %cst_6 = arith.constant dense<0.000000e+00> : vector<128x128xf32>
    %6 = tpu.matmul %0, %5, %cst_6 {dimension_numbers = #tpu.dot_dimension_numbers<[1], [0], [0], [1], [0, 0, 1, 1], [], []>} : vector<128x128xbf16>, vector<128x128xbf16>, vector<128x128xf32> -> vector<128x128xf32>
    %c0_7 = arith.constant 0 : index
    %7 = memref.load %arg4[%c0_7] : memref<3xf32, #tpu.memory_space<smem>>
    %cst_8 = arith.constant 1.000000e+00 : f32
    %8 = arith.addf %cst_8, %7 : f32
    %9 = vector.broadcast %8 : f32 to vector<128x128xf32>
    %10 = arith.mulf %9, %4 : vector<128x128xf32>
    %11 = arith.addf %10, %6 : vector<128x128xf32>
    %c0_9 = arith.constant 0 : index
    %c0_10 = arith.constant 0 : index
    %c0_11 = arith.constant 0 : index
    %12 = vector.load %arg3[%c0_9, %c0_10, %c0_11] : memref<2x1x128xf32, #tpu.memory_space<vmem>>, vector<1x1x128xf32>
    %13 = vector.shape_cast %12 : vector<1x1x128xf32> to vector<1x128xf32>
    %14 = vector.broadcast %13 : vector<1x128xf32> to vector<128x128xf32>
    %15 = arith.addf %11, %14 : vector<128x128xf32>
    %cst_12 = arith.constant 0.000000e+00 : f32
    %16 = vector.broadcast %cst_12 : f32 to vector<128x128xf32>
    %17 = arith.maximumf %15, %16 : vector<128x128xf32>
    %18 = arith.truncf %17 : vector<128x128xf32> to vector<128x128xbf16>
    %c1 = arith.constant 1 : index
    %c0_13 = arith.constant 0 : index
    %c0_14 = arith.constant 0 : index
    %19 = vector.load %arg2[%c1, %c0_13, %c0_14] : memref<2x128x128xbf16, #tpu.memory_space<vmem>>, vector<1x128x128xbf16>
    %20 = vector.shape_cast %19 : vector<1x128x128xbf16> to vector<128x128xbf16>
    %cst_15 = arith.constant dense<0.000000e+00> : vector<128x128xf32>
    %21 = tpu.matmul %18, %20, %cst_15 {dimension_numbers = #tpu.dot_dimension_numbers<[1], [0], [0], [1], [0, 0, 1, 1], [], []>} : vector<128x128xbf16>, vector<128x128xbf16>, vector<128x128xf32> -> vector<128x128xf32>
    %22 = arith.truncf %21 : vector<128x128xf32> to vector<128x128xbf16>
    %cst_16 = arith.constant dense<0.000000e+00> : vector<128x128xf32>
    %23 = tpu.matmul %0, %22, %cst_16 {dimension_numbers = #tpu.dot_dimension_numbers<[1], [0], [0], [1], [0, 0, 1, 1], [], []>} : vector<128x128xbf16>, vector<128x128xbf16>, vector<128x128xf32> -> vector<128x128xf32>
    %c1_17 = arith.constant 1 : index
    %24 = memref.load %arg4[%c1_17] : memref<3xf32, #tpu.memory_space<smem>>
    %cst_18 = arith.constant 1.000000e+00 : f32
    %25 = arith.addf %cst_18, %24 : f32
    %26 = vector.broadcast %25 : f32 to vector<128x128xf32>
    %27 = arith.mulf %26, %21 : vector<128x128xf32>
    %28 = arith.addf %27, %23 : vector<128x128xf32>
    %c1_19 = arith.constant 1 : index
    %c0_20 = arith.constant 0 : index
    %c0_21 = arith.constant 0 : index
    %29 = vector.load %arg3[%c1_19, %c0_20, %c0_21] : memref<2x1x128xf32, #tpu.memory_space<vmem>>, vector<1x1x128xf32>
    %30 = vector.shape_cast %29 : vector<1x1x128xf32> to vector<1x128xf32>
    %31 = vector.broadcast %30 : vector<1x128xf32> to vector<128x128xf32>
    %32 = arith.addf %28, %31 : vector<128x128xf32>
    %cst_22 = arith.constant 0.000000e+00 : f32
    %33 = vector.broadcast %cst_22 : f32 to vector<128x128xf32>
    %34 = arith.maximumf %32, %33 : vector<128x128xf32>
    %35 = arith.truncf %34 : vector<128x128xf32> to vector<128x128xbf16>
    %c1_23 = arith.constant 1 : index
    %c0_24 = arith.constant 0 : index
    %c0_25 = arith.constant 0 : index
    %36 = vector.load %arg2[%c1_23, %c0_24, %c0_25] : memref<2x128x128xbf16, #tpu.memory_space<vmem>>, vector<1x128x128xbf16>
    %37 = vector.shape_cast %36 : vector<1x128x128xbf16> to vector<128x128xbf16>
    %cst_26 = arith.constant dense<0.000000e+00> : vector<128x128xf32>
    %38 = tpu.matmul %35, %37, %cst_26 {dimension_numbers = #tpu.dot_dimension_numbers<[1], [0], [0], [1], [0, 0, 1, 1], [], []>} : vector<128x128xbf16>, vector<128x128xbf16>, vector<128x128xf32> -> vector<128x128xf32>
    %39 = arith.truncf %38 : vector<128x128xf32> to vector<128x128xbf16>
    %cst_27 = arith.constant dense<0.000000e+00> : vector<128x128xf32>
    %40 = tpu.matmul %0, %39, %cst_27 {dimension_numbers = #tpu.dot_dimension_numbers<[1], [0], [0], [1], [0, 0, 1, 1], [], []>} : vector<128x128xbf16>, vector<128x128xbf16>, vector<128x128xf32> -> vector<128x128xf32>
    %c2 = arith.constant 2 : index
    %41 = memref.load %arg4[%c2] : memref<3xf32, #tpu.memory_space<smem>>
    %cst_28 = arith.constant 1.000000e+00 : f32
    %42 = arith.addf %cst_28, %41 : f32
    %43 = vector.broadcast %42 : f32 to vector<128x128xf32>
    %44 = arith.mulf %43, %38 : vector<128x128xf32>
    %45 = arith.addf %44, %40 : vector<128x128xf32>
    %c1_29 = arith.constant 1 : index
    %c0_30 = arith.constant 0 : index
    %c0_31 = arith.constant 0 : index
    %46 = vector.load %arg3[%c1_29, %c0_30, %c0_31] : memref<2x1x128xf32, #tpu.memory_space<vmem>>, vector<1x1x128xf32>
    %47 = vector.shape_cast %46 : vector<1x1x128xf32> to vector<1x128xf32>
    %48 = vector.broadcast %47 : vector<1x128xf32> to vector<128x128xf32>
    %49 = arith.addf %45, %48 : vector<128x128xf32>
    %c0_32 = arith.constant 0 : index
    %c0_33 = arith.constant 0 : index
    %50 = vector.load %arg5[%c0_32, %c0_33] : memref<128x128xf32, #tpu.memory_space<vmem>>, vector<128x128xf32>
    tpu.vector_store %arg5[%c0_32, %c0_33], %49 {strides = array<i32>} : memref<128x128xf32, #tpu.memory_space<vmem>>, vector<128x128xf32>,
    return
  }
}

</mosaic_0001>

<bundles_post_ra>
// kernel: tpu_custom_call.1
= control target key start
LH: loop header
LB: loop body
LE: loop exit
PB: predicated region body
PF: predicated region fallthrough
CT: control target
= control target key end

     0   :  { %10 = vsyncpa [#allocation3], 0  ;;  %s2110_s0 = inlined_call_operand.hbm [shape: bf16[128,128], index: 0, kind: input, shape index: {}]   ;;  %s2111_s1 = inlined_call_operand.hbm [shape: bf16[128,128], index: 1, kind: input, shape index: {}]   ;;  %s2112_s2 = inlined_call_operand.hbm [shape: bf16[2,128,128], index: 2, kind: input, shape index: {}]   ;;  %s2113_s3 = inlined_call_operand.vmem [shape: f32[2,1,128], index: 3, kind: input, shape index: {}]   ;;  %s2114_s4 = inlined_call_operand.vmem [shape: f32[3], index: 4, kind: input, shape index: {}]   ;;  %s2115_s5 = inlined_call_operand.hbm [shape: f32[128,128], index: 5, kind: output, shape index: {}]  }
   0x1   :  { %11 = vsyncpa [#allocation7], 0 }
   0x2   :  { %12 = vsyncpa [#allocation5], 0 }
   0x3   :  { %13 = vsyncpa [#allocation4], 0  ;;  %s1664_s18 = smov [#allocation6]   ;;  %s1665_s20 = smov [#allocation2]  }
   0x4   :  { %s31_s19 = sshll.u32 %s1664_s18, 4  ;;  %s19_s21 = sshll.u32 %s1665_s20, 4  ;;  %s32_s19 = int_to_ptr.vmem [resolvable:$true] %s31_s19  ;;  %s1703_s21 = int_to_ptr.vmem [resolvable:$true] %s19_s21 }
   0x5   :  { %s1556_s24 = scalar_lea.hbm %s2111_s1, 1024 }
   0x6   :  { %p1557_p0 = scmp.ne.s32.totalorder %s2111_s1, %s1556_s24  ;;  %p1560_p1 = scmp.lt.u32.totalorder %s1556_s24, %s2111_s1 }
   0x8   :  { %p1562_p2 = pnand %p1560_p1, %p1557_p0 }
   0xa   :  { %1565 = shalt.err (!%p1562_p2)
}
   0xb   :  { %s1566_s29 = scalar_lea.vmem %s32_s19, 1024  ;;  %p1571_p4 = scmp.lt.s32.totalorder %s32_s19, %s32_s19 }
   0xc   :  { %p1567_p3 = scmp.ne.s32.totalorder %s32_s19, %s1566_s29  ;;  %p1572_p5 = scmp.lt.s32.totalorder %s1566_s29, %s1566_s29 }
   0xe   :  { %p1573_p6 = por %p1572_p5, %p1571_p4 }
  0x10   :  { %p1574_p7 = pnand %p1573_p6, %p1567_p3 }
  0x12   :  { %1577 = shalt.err (!%p1574_p7)
}
  0x13   :  { %s1666_s30 = smov 64   ;;  %s1667_s6 = smov 4  }
  0x14   :  { %37 = dma.hbm_to_vmem [thread:$0]  %s2111_s1, 1024, %s32_s19, [#allocation7], %s1666_s30, %s1666_s30, %s1667_s6  }
  0x15   :  { %s1578_s11 = scalar_lea.hbm %s2110_s0, 1024 }
  0x16   :  { %p1579_p8 = scmp.ne.s32.totalorder %s2110_s0, %s1578_s11  ;;  %p1582_p9 = scmp.lt.u32.totalorder %s1578_s11, %s2110_s0 }
  0x18   :  { %p1584_p10 = pnand %p1582_p9, %p1579_p8 }
  0x1a   :  { %1587 = shalt.err (!%p1584_p10)
}
  0x1b   :  { %s1588_s16 = scalar_lea.vmem %s1703_s21, 1024  ;;  %p1593_p12 = scmp.lt.s32.totalorder %s1703_s21, %s1703_s21 }
  0x1c   :  { %p1589_p11 = scmp.ne.s32.totalorder %s1703_s21, %s1588_s16  ;;  %p1594_p13 = scmp.lt.s32.totalorder %s1588_s16, %s1588_s16 }
  0x1e   :  { %p1595_p0 = por %p1594_p13, %p1593_p12 }
  0x20   :  { %p1596_p1 = pnand %p1595_p0, %p1589_p11 }
  0x22   :  { %1599 = shalt.err (!%p1596_p1)
}
  0x23   :  { %25 = dma.hbm_to_vmem [thread:$0]  %s2110_s0, 1024, %s1703_s21, [#allocation3], %s1666_s30, %s1666_s30, %s1667_s6  }
  0x24   :  { %s58_s20 = sshll.u32 %s2114_s4, 4  ;;  %s1668_s22 = smov [#allocation8]   ;;  %s59_s20 = int_to_ptr.vmem [resolvable:$true] %s58_s20 }
  0x25   :  { %s43_s23 = sshll.u32 %s1668_s22, 4  ;;  %s1600_s26 = scalar_lea.hbm %s2112_s2, 2048  ;;  %s44_s23 = int_to_ptr.vmem [resolvable:$true] %s43_s23 }
  0x26   :  { %p1601_p2 = scmp.ne.s32.totalorder %s2112_s2, %s1600_s26  ;;  %p1604_p3 = scmp.lt.u32.totalorder %s1600_s26, %s2112_s2 }
  0x28   :  { %p1606_p4 = pnand %p1604_p3, %p1601_p2 }
  0x2a   :  { %1609 = shalt.err (!%p1606_p4)
}
  0x2b   :  { %s1610_s0 = scalar_lea.vmem %s44_s23, 2048  ;;  %p1615_p6 = scmp.lt.s32.totalorder %s44_s23, %s44_s23 }
  0x2c   :  { %p1611_p5 = scmp.ne.s32.totalorder %s44_s23, %s1610_s0  ;;  %p1616_p7 = scmp.lt.s32.totalorder %s1610_s0, %s1610_s0 }
  0x2e   :  { %p1617_p8 = por %p1616_p7, %p1615_p6 }
  0x30   :  { %p1618_p9 = pnand %p1617_p8, %p1611_p5 }
  0x32   :  { %1621 = shalt.err (!%p1618_p9)
}
  0x33   :  { %49 = dma.hbm_to_vmem [thread:$0]  %s2112_s2, 2048, %s44_s23, [#allocation7], %s1666_s30, %s1666_s30, %s1667_s6  }
  0x34   :  { %s1622_s8 = scalar_lea.vmem %s59_s20, 16  ;;  %p1627_p11 = scmp.lt.s32.totalorder %s59_s20, %s59_s20 }
  0x35   :  { %p1623_p10 = scmp.ne.s32.totalorder %s59_s20, %s1622_s8  ;;  %p1628_p12 = scmp.lt.s32.totalorder %s1622_s8, %s1622_s8 }
  0x37   :  { %p1629_p13 = por %p1628_p12, %p1627_p11 }
  0x39   :  { %p1630_p0 = pnand %p1629_p13, %p1623_p10 }
  0x3b   :  { %1633 = shalt.err (!%p1630_p0)
}
  0x3c   :  { %s1669_s9 = smov [#allocation9]  }
  0x3d   :  { %61 = dma.vmem_to_smem %s59_s20, 16, %s1669_s9, [#allocation5]  }
  0x3e   :  { %1656 = dma.done.wait [#allocation3], 1024  }
  0x3f   :  { %1657 = vsyncadd [#allocation3], 4294966272 }
  0x40   :  { %1658 = dma.done.wait [#allocation7], 3072  }
  0x41   :  { %1659 = vsyncadd [#allocation7], 4294964224 }
  0x42   :  { %1660 = dma.done.wait [#allocation5], 16  }
  0x43   :  { %1661 = vsyncadd [#allocation5], 4294967280 }
  0x44   :  { %74 = sfence }
  0x45   :  { %v1524_v0 = vld [vmem:[#allocation8] sm:$0xff]   ;;  %v1525_v1 = vld [vmem:[#allocation8 + $0x8] sm:$0xff]   ;;  %v1526_v2 = vld [vmem:[#allocation8 + $0x10] sm:$0xff]   ;;  %s470_s2 = sld [smem:[#allocation9]]  ;;  %s1223_s11 = sld [smem:[#allocation9 + $0x1]] }
  0x46   :  { %1323 = vmatprep.subr.bf16.mxu0 %v1524_v0  ;;  %v1527_v3 = vld [vmem:[#allocation8 + $0x18] sm:$0xff]   ;;  %v1532_v4 = vld [vmem:[#allocation6] sm:$0xff]   ;;  %v1529_v6 = vld [vmem:[#allocation8 + $0x28] sm:$0xff]   ;;  %s1670_s16 = smov [#allocation10]  }
  0x47   :  { %1324 = vmatpush3.bf16.msra.mxu0 %v1524_v0  ;;  %1339 = vmatprep.mubr.bf16.mxu0 %v1532_v4  ;;  %v1528_v5 = vld [vmem:[#allocation8 + $0x20] sm:$0xff]   ;;  %v1530_v7 = vld [vmem:[#allocation8 + $0x30] sm:$0xff]   ;;  %v1531_v8 = vld [vmem:[#allocation8 + $0x38] sm:$0xff]   ;;  %s1176_s1 = sshll.u32 %s1670_s16, 4  ;;  %s1177_s1 = int_to_ptr.vmem [resolvable:$true] %s1176_s1 }
  0x48   :  { %1325 = vmatprep.subr.bf16.mxu0 %v1525_v1  ;;  %v1533_v9 = vld [vmem:[#allocation6 + $0x8] sm:$0xff]   ;;  %v1534_v10 = vld [vmem:[#allocation6 + $0x10] sm:$0xff]   ;;  %v1535_v11 = vld [vmem:[#allocation6 + $0x18] sm:$0xff]   ;;  %s1634_s17 = scalar_lea.vmem %s1177_s1, 2048  ;;  %p1639_p2 = scmp.lt.s32.totalorder %s1177_s1, %s1177_s1 }
  0x49   :  { %v1536_v12 = vld [vmem:[#allocation6 + $0x20] sm:$0xff]   ;;  %v1537_v13 = vld [vmem:[#allocation6 + $0x28] sm:$0xff]   ;;  %v1538_v14 = vld [vmem:[#allocation6 + $0x30] sm:$0xff]   ;;  %p1635_p1 = scmp.ne.s32.totalorder %s1177_s1, %s1634_s17  ;;  %p1640_p3 = scmp.lt.s32.totalorder %s1634_s17, %s1634_s17 }
  0x4a   :  { %v1539_v15 = vld [vmem:[#allocation6 + $0x38] sm:$0xff]   ;;  %v1758_v16 = vld [vmem:[#allocation2] sm:$0xff]   ;;  %v1763_v18 = vld [vmem:[#allocation8 + $0x48] sm:$0xff]  }
  0x4b   :  { %1326 = vmatpush3.bf16.msra.mxu0 %v1525_v1  ;;  %1371 = vmatprep.mubr.bf16.mxu1 %v1758_v16  ;;  %v1761_v17 = vld [vmem:[#allocation8 + $0x40] sm:$0xff]   ;;  %v1768_v19 = vld [vmem:[#allocation8 + $0x50] sm:$0xff]   ;;  %v1772_v20 = vld [vmem:[#allocation8 + $0x58] sm:$0xff]   ;;  %s471_s30 = sadd.f32 1.0, %s470_s2  ;;  %p1641_p4 = por %p1640_p3, %p1639_p2 }
  0x4c   :  { %1327 = vmatprep.subr.bf16.mxu0 %v1526_v2  ;;  %v1776_v21 = vld [vmem:[#allocation8 + $0x60] sm:$0xff]   ;;  %v1829_v46 = vld [vmem:[#allocation2 + $0x8] sm:$0xff]   ;;  %v1831_v47 = vld [vmem:[#allocation2 + $0x10] sm:$0xff]   ;;  %s820_s12 = sadd.f32 1.0, %s1223_s11 }
  0x4d   :  { %v1835_v48 = vld [vmem:[#allocation2 + $0x18] sm:$0xff]   ;;  %v1837_v49 = vld [vmem:[#allocation2 + $0x20] sm:$0xff]   ;;  %v1841_v50 = vld [vmem:[#allocation2 + $0x28] sm:$0xff]   ;;  %v1864_v56 = vstv %s471_s30  ;;  %p1642_p5 = pnand %p1641_p4, %p1635_p1 }
  0x4e   :  { %v1843_v51 = vld [vmem:[#allocation2 + $0x30] sm:$0xff]   ;;  %v1847_v52 = vld [vmem:[#allocation2 + $0x38] sm:$0xff]   ;;  %v1851_v53 = vld [vmem:[#allocation8 + $0x68] sm:$0xff]  }
  0x4f   :  { %1328 = vmatpush3.bf16.msra.mxu0 %v1526_v2  ;;  %v1855_v54 = vld [vmem:[#allocation8 + $0x70] sm:$0xff]   ;;  %v1859_v55 = vld [vmem:[#allocation8 + $0x78] sm:$0xff]   ;;  %v1873_v60 = vld [vmem:[%s2113_s3] ss:$0 sm:$0xff] }
  0x50   :  { %1329 = vmatprep.subr.bf16.mxu0 %v1527_v3 }
  0x53   :  { %1330 = vmatpush3.bf16.msra.mxu0 %v1527_v3 }
  0x54   :  { %1331 = vmatprep.subr.bf16.mxu0 %v1528_v5 }
  0x57   :  { %1332 = vmatpush3.bf16.msra.mxu0 %v1528_v5 }
  0x58   :  { %1333 = vmatprep.subr.bf16.mxu0 %v1529_v6 }
  0x5b   :  { %1334 = vmatpush3.bf16.msra.mxu0 %v1529_v6 }
  0x5c   :  { %1335 = vmatprep.subr.bf16.mxu0 %v1530_v7 }
  0x5f   :  { %1336 = vmatpush3.bf16.msra.mxu0 %v1530_v7 }
  0x60   :  { %1337 = vmatprep.subr.bf16.mxu0 %v1531_v8 }
  0x63   :  { %1338 = vmatpush3.bf16.msra.mxu0 %v1531_v8 }
  0x64   :  { %1387 = vmatprep.subr.bf16.mxu0 %v1761_v17 }
  0x66   :  { %1340 = vmatmul.mubr.bf16.vlgmr.msra.gmra.mrb[0].mxu0 %v1533_v9 }
  0x67   :  { %1343 = vmatprep.mubr.bf16.mxu0 %v1534_v10  ;;  %1388 = vmatpush3.bf16.msra.mxu0 %v1761_v17 }
  0x68   :  { %1389 = vmatprep.subr.bf16.mxu0 %v1763_v18 }
  0x6b   :  { %1390 = vmatpush3.bf16.msra.mxu0 %v1763_v18 }
  0x6c   :  { %1391 = vmatprep.subr.bf16.mxu0 %v1768_v19 }
  0x6e   :  { %1344 = vmatmul.mubr.bf16.gmra.mrb[4].mxu0 %v1535_v11 }
  0x6f   :  { %1347 = vmatprep.mubr.bf16.mxu0 %v1536_v12  ;;  %1392 = vmatpush3.bf16.msra.mxu0 %v1768_v19 }
  0x70   :  { %1393 = vmatprep.subr.bf16.mxu0 %v1772_v20 }
  0x73   :  { %1394 = vmatpush3.bf16.msra.mxu0 %v1772_v20 }
  0x74   :  { %1395 = vmatprep.subr.bf16.mxu0 %v1776_v21 }
  0x76   :  { %1348 = vmatmul.mubr.bf16.gmra.mrb[8].mxu0 %v1537_v13 }
  0x77   :  { %1351 = vmatprep.mubr.bf16.mxu0 %v1538_v14  ;;  %1396 = vmatpush3.bf16.msra.mxu0 %v1776_v21 }
  0x78   :  { %1397 = vmatprep.subr.bf16.mxu0 %v1851_v53 }
  0x7b   :  { %1398 = vmatpush3.bf16.msra.mxu0 %v1851_v53 }
  0x7c   :  { %1399 = vmatprep.subr.bf16.mxu0 %v1855_v54 }
  0x7e   :  { %1352 = vmatmul.mubr.bf16.gmra.mrb[12].mxu0 %v1539_v15 }
  0x7f   :  { %1400 = vmatpush3.bf16.msra.mxu0 %v1855_v54 }
  0x80   :  { %1401 = vmatprep.subr.bf16.mxu0 %v1859_v55 }
  0x83   :  { %1402 = vmatpush3.bf16.msra.mxu0 %v1859_v55 }
  0x84   :  { %1451 = vmatprep.subr.bf16.mxu0 %v1761_v17 }
 0x139   :  { %v1781_v22 = vpop.f32.mrb[0].mxu0 }
 0x13a   :  { %v1783_v23 = vpop.f32.mrb[1].mxu0  ;;  %v475_v57 = vmul.f32 %v1781_v22, %v1864_v56 }
 0x13b   :  { %v1785_v24 = vpop.f32.mrb[2].mxu0  ;;  %v473_v58 = vmul.f32 %v1864_v56, %v1783_v23 }
 0x13c   :  { %v318_v25 = vpack.c.bf16 %v1785_v24, %v1781_v22  ;;  %v1789_v26 = vpop.f32.mrb[3].mxu0  ;;  %v476_v61 = vmul.f32 %v1785_v24, %v1864_v56 }
 0x13d   :  { %v317_v27 = vpack.c.bf16 %v1789_v26, %v1783_v23  ;;  %v474_v0 = vmul.f32 %v1864_v56, %v1789_v26 }
 0x13f   :  { %1355 = vmatprep.subr.bf16.mxu1 %v317_v27 }
 0x140   :  { %1356 = vmatpush3.bf16.msra.mxu1 %v317_v27 }
 0x141   :  { %v1793_v28 = vpop.f32.mrb[4].mxu0  ;;  %1357 = vmatprep.subr.bf16.mxu1 %v318_v25 }
 0x142   :  { %v1795_v29 = vpop.f32.mrb[5].mxu0  ;;  %v479_v10 = vmul.f32 %v1793_v28, %v1864_v56 }
 0x143   :  { %v1797_v30 = vpop.f32.mrb[6].mxu0  ;;  %v477_v13 = vmul.f32 %v1864_v56, %v1795_v29 }
 0x144   :  { %v320_v31 = vpack.c.bf16 %v1797_v30, %v1793_v28  ;;  %v1801_v32 = vpop.f32.mrb[7].mxu0  ;;  %1358 = vmatpush3.bf16.msra.mxu1 %v318_v25  ;;  %v480_v23 = vmul.f32 %v1797_v30, %v1864_v56 }
 0x145   :  { %v319_v33 = vpack.c.bf16 %v1801_v32, %v1795_v29  ;;  %v478_v27 = vmul.f32 %v1864_v56, %v1801_v32 }
 0x147   :  { %1359 = vmatprep.subr.bf16.mxu1 %v319_v33 }
 0x148   :  { %1360 = vmatpush3.bf16.msra.mxu1 %v319_v33 }
 0x149   :  { %v1805_v34 = vpop.f32.mrb[8].mxu0  ;;  %1361 = vmatprep.subr.bf16.mxu1 %v320_v31 }
 0x14a   :  { %v1807_v35 = vpop.f32.mrb[9].mxu0  ;;  %v483_v32 = vmul.f32 %v1805_v34, %v1864_v56 }
 0x14b   :  { %v1809_v36 = vpop.f32.mrb[10].mxu0 }
 0x14c   :  { %v322_v37 = vpack.c.bf16 %v1809_v36, %v1805_v34  ;;  %v1813_v38 = vpop.f32.mrb[11].mxu0  ;;  %1362 = vmatpush3.bf16.msra.mxu1 %v320_v31 }
 0x14d   :  { %v321_v39 = vpack.c.bf16 %v1813_v38, %v1807_v35 }
 0x14f   :  { %1363 = vmatprep.subr.bf16.mxu1 %v321_v39 }
 0x150   :  { %1364 = vmatpush3.bf16.msra.mxu1 %v321_v39 }
 0x151   :  { %v1817_v40 = vpop.f32.mrb[12].mxu0  ;;  %1365 = vmatprep.subr.bf16.mxu1 %v322_v37 }
 0x152   :  { %v1819_v41 = vpop.f32.mrb[13].mxu0 }
 0x153   :  { %v1821_v42 = vpop.f32.mrb[14].mxu0 }
 0x154   :  { %v324_v43 = vpack.c.bf16 %v1821_v42, %v1817_v40  ;;  %v1825_v44 = vpop.f32.mrb[15].mxu0  ;;  %1366 = vmatpush3.bf16.msra.mxu1 %v322_v37 }
 0x155   :  { %v323_v45 = vpack.c.bf16 %v1825_v44, %v1819_v41 }
 0x157   :  { %1367 = vmatprep.subr.bf16.mxu1 %v323_v45 }
 0x158   :  { %1368 = vmatpush3.bf16.msra.mxu1 %v323_v45 }
 0x159   :  { %1369 = vmatprep.subr.bf16.mxu1 %v324_v43 }
 0x15c   :  { %1370 = vmatpush3.bf16.msra.mxu1 %v324_v43 }
 0x15f   :  { %1372 = vmatmul.mubr.bf16.vlgmr.msra.gmra.mrb[0].mxu1 %v1829_v46 }
 0x160   :  { %1375 = vmatprep.mubr.bf16.mxu1 %v1831_v47 }
 0x167   :  { %1376 = vmatmul.mubr.bf16.gmra.mrb[4].mxu1 %v1835_v48 }
 0x168   :  { %1379 = vmatprep.mubr.bf16.mxu1 %v1837_v49 }
 0x16f   :  { %1380 = vmatmul.mubr.bf16.gmra.mrb[8].mxu1 %v1841_v50 }
 0x170   :  { %1383 = vmatprep.mubr.bf16.mxu1 %v1843_v51 }
 0x177   :  { %1384 = vmatmul.mubr.bf16.gmra.mrb[12].mxu1 %v1847_v52 }
 0x178   :  { %1435 = vmatprep.mubr.bf16.mxu1 %v1758_v16 }
 0x232   :  { %v1373_v59 = vpop.f32.mrb[0].mxu1 }
 0x233   :  { %v491_v62 = vadd.f32 %v1373_v59, %v475_v57  ;;  %v407_v63 = vpop.f32.mrb[1].mxu1 }
 0x234   :  { %v489_v1 = vadd.f32 %v473_v58, %v407_v63  ;;  %v1374_v2 = vpop.f32.mrb[2].mxu1 }
 0x235   :  { %v514_v3 = vadd.f32 %v1873_v60, %v491_v62  ;;  %v492_v4 = vadd.f32 %v1374_v2, %v476_v61  ;;  %v410_v5 = vpop.f32.mrb[3].mxu1  ;;  %v481_v61 = vmul.f32 %v1864_v56, %v1807_v35 }
 0x236   :  { %v512_v6 = vadd.f32 %v1873_v60, %v489_v1  ;;  %v490_v7 = vadd.f32 %v474_v0, %v410_v5  ;;  %v484_v1 = vmul.f32 %v1809_v36, %v1864_v56 }
 0x237   :  { %v515_v8 = vadd.f32 %v1873_v60, %v492_v4  ;;  %v530_v11 = vmax.f32 %v514_v3, 0.0 }
 0x238   :  { %v513_v9 = vadd.f32 %v1873_v60, %v490_v7  ;;  %v528_v14 = vmax.f32 %v512_v6, 0.0 }
 0x239   :  { %v531_v12 = vmax.f32 %v515_v8, 0.0 }
 0x23a   :  { %v529_v15 = vmax.f32 %v513_v9, 0.0  ;;  %v1377_v22 = vpop.f32.mrb[4].mxu1 }
 0x23b   :  { %v545_v24 = vpack.c.bf16 %v531_v12, %v530_v11  ;;  %v495_v25 = vadd.f32 %v1377_v22, %v479_v10  ;;  %v423_v26 = vpop.f32.mrb[5].mxu1 }
 0x23c   :  { %v493_v31 = vadd.f32 %v477_v13, %v423_v26  ;;  %v1378_v33 = vpop.f32.mrb[6].mxu1  ;;  %v544_v28 = vpack.c.bf16 %v529_v15, %v528_v14  ;;  %v485_v13 = vmul.f32 %v1864_v56, %v1819_v41 }
 0x23d   :  { %v518_v37 = vadd.f32 %v1873_v60, %v495_v25  ;;  %v496_v39 = vadd.f32 %v1378_v33, %v480_v23  ;;  %v426_v43 = vpop.f32.mrb[7].mxu1  ;;  %v488_v23 = vmul.f32 %v1821_v42, %v1864_v56 }
 0x23e   :  { %v516_v29 = vadd.f32 %v1873_v60, %v493_v31  ;;  %v494_v45 = vadd.f32 %v478_v27, %v426_v43  ;;  %1403 = vmatprep.mubr.bf16.mxu0 %v544_v28 }
 0x23f   :  { %v519_v57 = vadd.f32 %v1873_v60, %v496_v39  ;;  %1404 = vmatmul.mubr.bf16.vlgmr.msra.gmra.mrb[16].mxu0 %v545_v24  ;;  %v534_v58 = vmax.f32 %v518_v37, 0.0 }
 0x240   :  { %v517_v30 = vadd.f32 %v1873_v60, %v494_v45  ;;  %1452 = vmatpush3.bf16.msra.mxu0 %v1761_v17  ;;  %v532_v62 = vmax.f32 %v516_v29, 0.0  ;;  %v482_v17 = vmul.f32 %v1864_v56, %v1813_v38 }
 0x241   :  { %v535_v59 = vmax.f32 %v519_v57, 0.0  ;;  %1453 = vmatprep.subr.bf16.mxu0 %v1763_v18 }
 0x242   :  { %v533_v63 = vmax.f32 %v517_v30, 0.0  ;;  %v1381_v0 = vpop.f32.mrb[8].mxu1 }
 0x243   :  { %v499_v2 = vadd.f32 %v1381_v0, %v483_v32  ;;  %v439_v3 = vpop.f32.mrb[9].mxu1  ;;  %v547_v4 = vpack.c.bf16 %v535_v59, %v534_v58 }
 0x244   :  { %v497_v34 = vadd.f32 %v481_v61, %v439_v3  ;;  %v1382_v5 = vpop.f32.mrb[10].mxu1  ;;  %v546_v6 = vpack.c.bf16 %v533_v63, %v532_v62  ;;  %1454 = vmatpush3.bf16.msra.mxu0 %v1763_v18  ;;  %v487_v18 = vmul.f32 %v1817_v40, %v1864_v56 }
 0x245   :  { %v522_v7 = vadd.f32 %v1873_v60, %v499_v2  ;;  %v500_v35 = vadd.f32 %v1382_v5, %v484_v1  ;;  %v442_v8 = vpop.f32.mrb[11].mxu1  ;;  %1455 = vmatprep.subr.bf16.mxu0 %v1768_v19 }
 0x246   :  { %v520_v9 = vadd.f32 %v1873_v60, %v497_v34  ;;  %v498_v36 = vadd.f32 %v482_v17, %v442_v8  ;;  %1407 = vmatprep.mubr.bf16.mxu0 %v546_v6 }
 0x247   :  { %v523_v10 = vadd.f32 %v1873_v60, %v500_v35  ;;  %1408 = vmatmul.mubr.bf16.gmra.mrb[20].mxu0 %v547_v4  ;;  %v538_v11 = vmax.f32 %v522_v7, 0.0 }
 0x248   :  { %v521_v38 = vadd.f32 %v1873_v60, %v498_v36  ;;  %1456 = vmatpush3.bf16.msra.mxu0 %v1768_v19  ;;  %v536_v14 = vmax.f32 %v520_v9, 0.0  ;;  %v486_v19 = vmul.f32 %v1864_v56, %v1825_v44  ;;  %v1972_v9 = vstv %s820_s12 }
 0x249   :  { %v539_v12 = vmax.f32 %v523_v10, 0.0  ;;  %1457 = vmatprep.subr.bf16.mxu0 %v1772_v20 }
 0x24a   :  { %v537_v15 = vmax.f32 %v521_v38, 0.0  ;;  %v1385_v22 = vpop.f32.mrb[12].mxu1 }
 0x24b   :  { %v503_v24 = vadd.f32 %v1385_v22, %v487_v18  ;;  %v455_v25 = vpop.f32.mrb[13].mxu1  ;;  %v549_v26 = vpack.c.bf16 %v539_v12, %v538_v11  ;;  %v1979_v18 = vld [vmem:[%s2113_s3 + $0x1] ss:$0 sm:$0xff]  ;;  %s1226_s3 = sld [smem:[#allocation9 + $0x2]] }
 0x24c   :  { %v501_v40 = vadd.f32 %v485_v13, %v455_v25  ;;  %v1386_v27 = vpop.f32.mrb[14].mxu1  ;;  %v548_v31 = vpack.c.bf16 %v537_v15, %v536_v14  ;;  %1458 = vmatpush3.bf16.msra.mxu0 %v1772_v20 }
 0x24d   :  { %v526_v33 = vadd.f32 %v1873_v60, %v503_v24  ;;  %v504_v41 = vadd.f32 %v1386_v27, %v488_v23  ;;  %v458_v28 = vpop.f32.mrb[15].mxu1  ;;  %1459 = vmatprep.subr.bf16.mxu0 %v1776_v21 }
 0x24e   :  { %v524_v37 = vadd.f32 %v1873_v60, %v501_v40  ;;  %v502_v42 = vadd.f32 %v486_v19, %v458_v28  ;;  %1411 = vmatprep.mubr.bf16.mxu0 %v548_v31 }
 0x24f   :  { %v527_v39 = vadd.f32 %v1873_v60, %v504_v41  ;;  %1412 = vmatmul.mubr.bf16.gmra.mrb[24].mxu0 %v549_v26  ;;  %v542_v56 = vmax.f32 %v526_v33, 0.0 }
 0x250   :  { %v525_v44 = vadd.f32 %v1873_v60, %v502_v42  ;;  %1460 = vmatpush3.bf16.msra.mxu0 %v1776_v21  ;;  %v540_v20 = vmax.f32 %v524_v37, 0.0 }
 0x251   :  { %v543_v43 = vmax.f32 %v527_v39, 0.0  ;;  %1461 = vmatprep.subr.bf16.mxu0 %v1851_v53  ;;  %s1105_s15 = sadd.f32 1.0, %s1226_s3 }
 0x252   :  { %v541_v29 = vmax.f32 %v525_v44, 0.0 }
 0x253   :  { %v551_v45 = vpack.c.bf16 %v543_v43, %v542_v56 }
 0x254   :  { %v550_v57 = vpack.c.bf16 %v541_v29, %v540_v20  ;;  %1462 = vmatpush3.bf16.msra.mxu0 %v1851_v53 }
 0x255   :  { %1463 = vmatprep.subr.bf16.mxu0 %v1855_v54 }
 0x256   :  { %1415 = vmatprep.mubr.bf16.mxu0 %v550_v57 }
 0x257   :  { %1416 = vmatmul.mubr.bf16.gmra.mrb[28].mxu0 %v551_v45 }
 0x258   :  { %1464 = vmatpush3.bf16.msra.mxu0 %v1855_v54 }
 0x259   :  { %1465 = vmatprep.subr.bf16.mxu0 %v1859_v55 }
 0x25c   :  { %1466 = vmatpush3.bf16.msra.mxu0 %v1859_v55 }
 0x312   :  { %v1405_v21 = vpop.f32.mrb[16].mxu0 }
 0x313   :  { %v651_v60 = vpop.f32.mrb[17].mxu0  ;;  %v824_v36 = vmul.f32 %v1405_v21, %v1972_v9 }
 0x314   :  { %v1406_v30 = vpop.f32.mrb[18].mxu0  ;;  %v822_v10 = vmul.f32 %v1972_v9, %v651_v60 }
 0x315   :  { %v715_v32 = vpack.c.bf16 %v1406_v30, %v1405_v21  ;;  %v654_v58 = vpop.f32.mrb[19].mxu0  ;;  %v825_v11 = vmul.f32 %v1406_v30, %v1972_v9 }
 0x316   :  { %v714_v59 = vpack.c.bf16 %v654_v58, %v651_v60 }
 0x318   :  { %1419 = vmatprep.subr.bf16.mxu1 %v714_v59 }
 0x319   :  { %1420 = vmatpush3.bf16.msra.mxu1 %v714_v59 }
 0x31a   :  { %v1409_v61 = vpop.f32.mrb[20].mxu0  ;;  %1421 = vmatprep.subr.bf16.mxu1 %v715_v32 }
 0x31b   :  { %v667_v53 = vpop.f32.mrb[21].mxu0  ;;  %v828_v27 = vmul.f32 %v1409_v61, %v1972_v9 }
 0x31c   :  { %v1934_v62 = vpop.f32.mrb[22].mxu0  ;;  %v826_v41 = vmul.f32 %v1972_v9, %v667_v53 }
 0x31d   :  { %v717_v63 = vpack.c.bf16 %v1934_v62, %v1409_v61  ;;  %v1937_v54 = vpop.f32.mrb[23].mxu0  ;;  %1422 = vmatpush3.bf16.msra.mxu1 %v715_v32  ;;  %v829_v39 = vmul.f32 %v1934_v62, %v1972_v9 }
 0x31e   :  { %v716_v55 = vpack.c.bf16 %v1937_v54, %v667_v53  ;;  %v827_v20 = vmul.f32 %v1972_v9, %v1937_v54 }
 0x320   :  { %1423 = vmatprep.subr.bf16.mxu1 %v716_v55 }
 0x321   :  { %1424 = vmatpush3.bf16.msra.mxu1 %v716_v55 }
 0x322   :  { %v1940_v0 = vpop.f32.mrb[24].mxu0  ;;  %1425 = vmatprep.subr.bf16.mxu1 %v717_v63 }
 0x323   :  { %v1942_v1 = vpop.f32.mrb[25].mxu0  ;;  %v832_v53 = vmul.f32 %v1940_v0, %v1972_v9 }
 0x324   :  { %v1944_v2 = vpop.f32.mrb[26].mxu0  ;;  %v830_v54 = vmul.f32 %v1972_v9, %v1942_v1 }
 0x325   :  { %v719_v3 = vpack.c.bf16 %v1944_v2, %v1940_v0  ;;  %v1948_v4 = vpop.f32.mrb[27].mxu0  ;;  %1426 = vmatpush3.bf16.msra.mxu1 %v717_v63 }
 0x326   :  { %v718_v17 = vpack.c.bf16 %v1948_v4, %v1942_v1 }
 0x328   :  { %1427 = vmatprep.subr.bf16.mxu1 %v718_v17 }
 0x329   :  { %1428 = vmatpush3.bf16.msra.mxu1 %v718_v17 }
 0x32a   :  { %v1952_v34 = vpop.f32.mrb[28].mxu0  ;;  %1429 = vmatprep.subr.bf16.mxu1 %v719_v3 }
 0x32b   :  { %v1954_v5 = vpop.f32.mrb[29].mxu0 }
 0x32c   :  { %v1956_v6 = vpop.f32.mrb[30].mxu0 }
 0x32d   :  { %v721_v7 = vpack.c.bf16 %v1956_v6, %v1952_v34  ;;  %v1960_v35 = vpop.f32.mrb[31].mxu0  ;;  %1430 = vmatpush3.bf16.msra.mxu1 %v719_v3 }
 0x32e   :  { %v720_v8 = vpack.c.bf16 %v1960_v35, %v1954_v5 }
 0x330   :  { %1431 = vmatprep.subr.bf16.mxu1 %v720_v8 }
 0x331   :  { %1432 = vmatpush3.bf16.msra.mxu1 %v720_v8 }
 0x332   :  { %1433 = vmatprep.subr.bf16.mxu1 %v721_v7 }
 0x335   :  { %1434 = vmatpush3.bf16.msra.mxu1 %v721_v7  ;;  %v833_v7 = vmul.f32 %v1944_v2, %v1972_v9 }
 0x338   :  { %1436 = vmatmul.mubr.bf16.vlgmr.msra.gmra.mrb[16].mxu1 %v1829_v46 }
 0x339   :  { %1439 = vmatprep.mubr.bf16.mxu1 %v1831_v47 }
 0x340   :  { %1440 = vmatmul.mubr.bf16.gmra.mrb[20].mxu1 %v1835_v48 }
 0x341   :  { %1443 = vmatprep.mubr.bf16.mxu1 %v1837_v49 }
 0x348   :  { %1444 = vmatmul.mubr.bf16.gmra.mrb[24].mxu1 %v1841_v50 }
 0x349   :  { %1447 = vmatprep.mubr.bf16.mxu1 %v1843_v51 }
 0x350   :  { %1448 = vmatmul.mubr.bf16.gmra.mrb[28].mxu1 %v1847_v52 }
 0x351   :  { %1499 = vmatprep.mubr.bf16.mxu1 %v1758_v16  ;;  %v823_v16 = vmul.f32 %v1972_v9, %v654_v58 }
 0x40b   :  { %v1437_v38 = vpop.f32.mrb[16].mxu1 }
 0x40c   :  { %v840_v12 = vadd.f32 %v1437_v38, %v824_v36  ;;  %v756_v13 = vpop.f32.mrb[17].mxu1  ;;  %v831_v38 = vmul.f32 %v1972_v9, %v1948_v4 }
 0x40d   :  { %v838_v14 = vadd.f32 %v822_v10, %v756_v13  ;;  %v1438_v15 = vpop.f32.mrb[18].mxu1 }
 0x40e   :  { %v864_v22 = vadd.f32 %v1979_v18, %v840_v12  ;;  %v841_v23 = vadd.f32 %v1438_v15, %v825_v11  ;;  %v759_v24 = vpop.f32.mrb[19].mxu1 }
 0x40f   :  { %v862_v25 = vadd.f32 %v1979_v18, %v838_v14  ;;  %v839_v26 = vadd.f32 %v823_v16, %v759_v24 }
 0x410   :  { %v865_v19 = vadd.f32 %v1979_v18, %v841_v23  ;;  %v880_v31 = vmax.f32 %v864_v22, 0.0  ;;  %v836_v23 = vmul.f32 %v1952_v34, %v1972_v9 }
 0x411   :  { %v863_v40 = vadd.f32 %v1979_v18, %v839_v26  ;;  %v878_v28 = vmax.f32 %v862_v25, 0.0  ;;  %v834_v25 = vmul.f32 %v1972_v9, %v1954_v5 }
 0x412   :  { %v881_v33 = vmax.f32 %v865_v19, 0.0 }
 0x413   :  { %v879_v37 = vmax.f32 %v863_v40, 0.0  ;;  %v1441_v42 = vpop.f32.mrb[20].mxu1 }
 0x414   :  { %v895_v44 = vpack.c.bf16 %v881_v33, %v880_v31  ;;  %v844_v56 = vadd.f32 %v1441_v42, %v828_v27  ;;  %v772_v43 = vpop.f32.mrb[21].mxu1  ;;  %v837_v27 = vmul.f32 %v1956_v6, %v1972_v9 }
 0x415   :  { %v842_v29 = vadd.f32 %v826_v41, %v772_v43  ;;  %v1442_v45 = vpop.f32.mrb[22].mxu1  ;;  %v894_v57 = vpack.c.bf16 %v879_v37, %v878_v28  ;;  %v835_v28 = vmul.f32 %v1972_v9, %v1960_v35 }
 0x416   :  { %v868_v21 = vadd.f32 %v1979_v18, %v844_v56  ;;  %v845_v60 = vadd.f32 %v1442_v45, %v829_v39  ;;  %v775_v30 = vpop.f32.mrb[23].mxu1 }
 0x417   :  { %v866_v32 = vadd.f32 %v1979_v18, %v842_v29  ;;  %v843_v58 = vadd.f32 %v827_v20, %v775_v30  ;;  %1467 = vmatprep.mubr.bf16.mxu0 %v894_v57 }
 0x418   :  { %v869_v59 = vadd.f32 %v1979_v18, %v845_v60  ;;  %1468 = vmatmul.mubr.bf16.vlgmr.msra.gmra.mrb[32].mxu0 %v895_v44  ;;  %v884_v62 = vmax.f32 %v868_v21, 0.0 }
 0x419   :  { %v867_v61 = vadd.f32 %v1979_v18, %v843_v58  ;;  %v882_v55 = vmax.f32 %v866_v32, 0.0 }
 0x41a   :  { %v885_v63 = vmax.f32 %v869_v59, 0.0 }
 0x41b   :  { %v883_v3 = vmax.f32 %v867_v61, 0.0  ;;  %v1445_v17 = vpop.f32.mrb[24].mxu1 }
 0x41c   :  { %v848_v8 = vadd.f32 %v1445_v17, %v832_v53  ;;  %v788_v36 = vpop.f32.mrb[25].mxu1  ;;  %v897_v10 = vpack.c.bf16 %v885_v63, %v884_v62 }
 0x41d   :  { %v846_v11 = vadd.f32 %v830_v54, %v788_v36  ;;  %v1446_v12 = vpop.f32.mrb[26].mxu1  ;;  %v896_v0 = vpack.c.bf16 %v883_v3, %v882_v55 }
 0x41e   :  { %v872_v13 = vadd.f32 %v1979_v18, %v848_v8  ;;  %v849_v16 = vadd.f32 %v1446_v12, %v833_v7  ;;  %v791_v14 = vpop.f32.mrb[27].mxu1 }
 0x41f   :  { %v870_v1 = vadd.f32 %v1979_v18, %v846_v11  ;;  %v847_v15 = vadd.f32 %v831_v38, %v791_v14  ;;  %1471 = vmatprep.mubr.bf16.mxu0 %v896_v0 }
 0x420   :  { %v873_v22 = vadd.f32 %v1979_v18, %v849_v16  ;;  %1472 = vmatmul.mubr.bf16.gmra.mrb[36].mxu0 %v897_v10  ;;  %v888_v4 = vmax.f32 %v872_v13, 0.0 }
 0x421   :  { %v871_v2 = vadd.f32 %v1979_v18, %v847_v15  ;;  %v886_v26 = vmax.f32 %v870_v1, 0.0  ;;  %v2055_v1 = vstv %s1105_s15 }
 0x422   :  { %v889_v24 = vmax.f32 %v873_v22, 0.0 }
 0x423   :  { %v887_v19 = vmax.f32 %v871_v2, 0.0  ;;  %v1449_v40 = vpop.f32.mrb[28].mxu1 }
 0x424   :  { %v852_v31 = vadd.f32 %v1449_v40, %v836_v23  ;;  %v804_v33 = vpop.f32.mrb[29].mxu1  ;;  %v899_v41 = vpack.c.bf16 %v889_v24, %v888_v4 }
 0x425   :  { %v850_v37 = vadd.f32 %v834_v25, %v804_v33  ;;  %v1450_v42 = vpop.f32.mrb[30].mxu1  ;;  %v898_v34 = vpack.c.bf16 %v887_v19, %v886_v26 }
 0x426   :  { %v876_v39 = vadd.f32 %v1979_v18, %v852_v31  ;;  %v853_v44 = vadd.f32 %v1450_v42, %v837_v27  ;;  %v807_v56 = vpop.f32.mrb[31].mxu1 }
 0x427   :  { %v874_v5 = vadd.f32 %v1979_v18, %v850_v37  ;;  %v851_v43 = vadd.f32 %v835_v28, %v807_v56  ;;  %1475 = vmatprep.mubr.bf16.mxu0 %v898_v34 }
 0x428   :  { %v877_v20 = vadd.f32 %v1979_v18, %v853_v44  ;;  %1476 = vmatmul.mubr.bf16.gmra.mrb[40].mxu0 %v899_v41  ;;  %v892_v29 = vmax.f32 %v876_v39, 0.0 }
 0x429   :  { %v875_v6 = vadd.f32 %v1979_v18, %v851_v43  ;;  %v890_v57 = vmax.f32 %v874_v5, 0.0 }
 0x42a   :  { %v893_v45 = vmax.f32 %v877_v20, 0.0 }
 0x42b   :  { %v891_v35 = vmax.f32 %v875_v6, 0.0 }
 0x42c   :  { %v901_v9 = vpack.c.bf16 %v893_v45, %v892_v29 }
 0x42d   :  { %v900_v21 = vpack.c.bf16 %v891_v35, %v890_v57 }
 0x42f   :  { %1479 = vmatprep.mubr.bf16.mxu0 %v900_v21 }
 0x430   :  { %1480 = vmatmul.mubr.bf16.gmra.mrb[44].mxu0 %v901_v9 }
 0x4eb   :  { %v1469_v60 = vpop.f32.mrb[32].mxu0 }
 0x4ec   :  { %v936_v30 = vpop.f32.mrb[33].mxu0  ;;  %v1109_v15 = vmul.f32 %v1469_v60, %v2055_v1 }
 0x4ed   :  { %v1470_v32 = vpop.f32.mrb[34].mxu0 }
 0x4ee   :  { %v1000_v58 = vpack.c.bf16 %v1470_v32, %v1469_v60  ;;  %v939_v59 = vpop.f32.mrb[35].mxu0 }
 0x4ef   :  { %v999_v61 = vpack.c.bf16 %v939_v59, %v936_v30 }
 0x4f1   :  { %1483 = vmatprep.subr.bf16.mxu1 %v999_v61 }
 0x4f2   :  { %1484 = vmatpush3.bf16.msra.mxu1 %v999_v61 }
 0x4f3   :  { %v1473_v53 = vpop.f32.mrb[36].mxu0  ;;  %1485 = vmatprep.subr.bf16.mxu1 %v1000_v58 }
 0x4f4   :  { %v952_v62 = vpop.f32.mrb[37].mxu0  ;;  %v1113_v40 = vmul.f32 %v1473_v53, %v2055_v1 }
 0x4f5   :  { %v1474_v63 = vpop.f32.mrb[38].mxu0  ;;  %v1111_v27 = vmul.f32 %v2055_v1, %v952_v62 }
 0x4f6   :  { %v1002_v54 = vpack.c.bf16 %v1474_v63, %v1473_v53  ;;  %v2021_v55 = vpop.f32.mrb[39].mxu0  ;;  %1486 = vmatpush3.bf16.msra.mxu1 %v1000_v58  ;;  %v1114_v33 = vmul.f32 %v1474_v63, %v2055_v1 }
 0x4f7   :  { %v1001_v3 = vpack.c.bf16 %v2021_v55, %v952_v62  ;;  %v1112_v37 = vmul.f32 %v2055_v1, %v2021_v55 }
 0x4f9   :  { %1487 = vmatprep.subr.bf16.mxu1 %v1001_v3 }
 0x4fa   :  { %1488 = vmatpush3.bf16.msra.mxu1 %v1001_v3 }
 0x4fb   :  { %v2024_v17 = vpop.f32.mrb[40].mxu0  ;;  %1489 = vmatprep.subr.bf16.mxu1 %v1002_v54 }
 0x4fc   :  { %v2026_v7 = vpop.f32.mrb[41].mxu0  ;;  %v1117_v29 = vmul.f32 %v2024_v17, %v2055_v1 }
 0x4fd   :  { %v2028_v8 = vpop.f32.mrb[42].mxu0  ;;  %v1115_v45 = vmul.f32 %v2055_v1, %v2026_v7 }
 0x4fe   :  { %v1004_v36 = vpack.c.bf16 %v2028_v8, %v2024_v17  ;;  %v2032_v10 = vpop.f32.mrb[43].mxu0  ;;  %1490 = vmatpush3.bf16.msra.mxu1 %v1002_v54  ;;  %v1118_v35 = vmul.f32 %v2028_v8, %v2055_v1 }
 0x4ff   :  { %v1003_v38 = vpack.c.bf16 %v2032_v10, %v2026_v7  ;;  %v1116_v60 = vmul.f32 %v2055_v1, %v2032_v10 }
 0x501   :  { %1491 = vmatprep.subr.bf16.mxu1 %v1003_v38 }
 0x502   :  { %1492 = vmatpush3.bf16.msra.mxu1 %v1003_v38 }
 0x503   :  { %v2036_v11 = vpop.f32.mrb[44].mxu0  ;;  %1493 = vmatprep.subr.bf16.mxu1 %v1004_v36 }
 0x504   :  { %v2038_v12 = vpop.f32.mrb[45].mxu0  ;;  %v1121_v55 = vmul.f32 %v2036_v11, %v2055_v1 }
 0x505   :  { %v2040_v0 = vpop.f32.mrb[46].mxu0  ;;  %v1119_v3 = vmul.f32 %v2055_v1, %v2038_v12 }
 0x506   :  { %v1006_v13 = vpack.c.bf16 %v2040_v0, %v2036_v11  ;;  %v2044_v16 = vpop.f32.mrb[47].mxu0  ;;  %1494 = vmatpush3.bf16.msra.mxu1 %v1004_v36  ;;  %v1122_v7 = vmul.f32 %v2040_v0, %v2055_v1 }
 0x507   :  { %v1005_v14 = vpack.c.bf16 %v2044_v16, %v2038_v12  ;;  %v1120_v10 = vmul.f32 %v2055_v1, %v2044_v16 }
 0x509   :  { %1495 = vmatprep.subr.bf16.mxu1 %v1005_v14 }
 0x50a   :  { %1496 = vmatpush3.bf16.msra.mxu1 %v1005_v14 }
 0x50b   :  { %1497 = vmatprep.subr.bf16.mxu1 %v1006_v13 }
 0x50e   :  { %1498 = vmatpush3.bf16.msra.mxu1 %v1006_v13 }
 0x511   :  { %1500 = vmatmul.mubr.bf16.vlgmr.msra.gmra.mrb[32].mxu1 %v1829_v46  ;;  %v1107_v46 = vmul.f32 %v2055_v1, %v936_v30 }
 0x512   :  { %1503 = vmatprep.mubr.bf16.mxu1 %v1831_v47  ;;  %v1110_v47 = vmul.f32 %v1470_v32, %v2055_v1 }
 0x519   :  { %1504 = vmatmul.mubr.bf16.gmra.mrb[36].mxu1 %v1835_v48 }
 0x51a   :  { %1507 = vmatprep.mubr.bf16.mxu1 %v1837_v49  ;;  %v1108_v49 = vmul.f32 %v2055_v1, %v939_v59 }
 0x521   :  { %1508 = vmatmul.mubr.bf16.gmra.mrb[40].mxu1 %v1841_v50 }
 0x522   :  { %1511 = vmatprep.mubr.bf16.mxu1 %v1843_v51 }
 0x529   :  { %1512 = vmatmul.mubr.bf16.gmra.mrb[44].mxu1 %v1847_v52 }
 0x5e4   :  { %v1501_v22 = vpop.f32.mrb[32].mxu1 }
 0x5e5   :  { %v1125_v48 = vadd.f32 %v1501_v22, %v1109_v15  ;;  %v1041_v2 = vpop.f32.mrb[33].mxu1 }
 0x5e6   :  { %v1123_v50 = vadd.f32 %v1107_v46, %v1041_v2  ;;  %v1502_v23 = vpop.f32.mrb[34].mxu1 }
 0x5e7   :  { %v1141_v51 = vadd.f32 %v1979_v18, %v1125_v48  ;;  %v1126_v52 = vadd.f32 %v1502_v23, %v1110_v47  ;;  %v1044_v4 = vpop.f32.mrb[35].mxu1 }
 0x5e8   :  { %v1139_v24 = vadd.f32 %v1979_v18, %v1123_v50  ;;  %v1124_v25 = vadd.f32 %v1108_v49, %v1044_v4 }
 0x5e9   :  { %1157 = vst [vmem:[#allocation10 + $0x10] sm:$0xff] %v1141_v51  ;;  %v1142_v26 = vadd.f32 %v1979_v18, %v1126_v52 }
 0x5ea   :  { %1155 = vst [vmem:[#allocation10] sm:$0xff] %v1139_v24  ;;  %v1140_v19 = vadd.f32 %v1979_v18, %v1124_v25 }
 0x5eb   :  { %1158 = vst [vmem:[#allocation10 + $0x18] sm:$0xff] %v1142_v26 }
 0x5ec   :  { %1156 = vst [vmem:[#allocation10 + $0x8] sm:$0xff] %v1140_v19  ;;  %v1505_v31 = vpop.f32.mrb[36].mxu1 }
 0x5ed   :  { %v1129_v41 = vadd.f32 %v1505_v31, %v1113_v40  ;;  %v1057_v28 = vpop.f32.mrb[37].mxu1 }
 0x5ee   :  { %v1127_v42 = vadd.f32 %v1111_v27, %v1057_v28  ;;  %v1506_v34 = vpop.f32.mrb[38].mxu1 }
 0x5ef   :  { %v1145_v39 = vadd.f32 %v1979_v18, %v1129_v41  ;;  %v1130_v44 = vadd.f32 %v1506_v34, %v1114_v33  ;;  %v1060_v56 = vpop.f32.mrb[39].mxu1 }
 0x5f0   :  { %v1143_v5 = vadd.f32 %v1979_v18, %v1127_v42  ;;  %v1128_v43 = vadd.f32 %v1112_v37, %v1060_v56 }
 0x5f1   :  { %1161 = vst [vmem:[#allocation10 + $0x30] sm:$0xff] %v1145_v39  ;;  %v1146_v20 = vadd.f32 %v1979_v18, %v1130_v44 }
 0x5f2   :  { %1159 = vst [vmem:[#allocation10 + $0x20] sm:$0xff] %v1143_v5  ;;  %v1144_v6 = vadd.f32 %v1979_v18, %v1128_v43 }
 0x5f3   :  { %1162 = vst [vmem:[#allocation10 + $0x38] sm:$0xff] %v1146_v20 }
 0x5f4   :  { %1160 = vst [vmem:[#allocation10 + $0x28] sm:$0xff] %v1144_v6  ;;  %v1509_v57 = vpop.f32.mrb[40].mxu1 }
 0x5f5   :  { %v1133_v9 = vadd.f32 %v1509_v57, %v1117_v29  ;;  %v1073_v21 = vpop.f32.mrb[41].mxu1 }
 0x5f6   :  { %v1131_v30 = vadd.f32 %v1115_v45, %v1073_v21  ;;  %v1510_v32 = vpop.f32.mrb[42].mxu1 }
 0x5f7   :  { %v1149_v58 = vadd.f32 %v1979_v18, %v1133_v9  ;;  %v1134_v59 = vadd.f32 %v1510_v32, %v1118_v35  ;;  %v1076_v61 = vpop.f32.mrb[43].mxu1 }
 0x5f8   :  { %v1147_v53 = vadd.f32 %v1979_v18, %v1131_v30  ;;  %v1132_v62 = vadd.f32 %v1116_v60, %v1076_v61 }
 0x5f9   :  { %1165 = vst [vmem:[#allocation10 + $0x50] sm:$0xff] %v1149_v58  ;;  %v1150_v63 = vadd.f32 %v1979_v18, %v1134_v59 }
 0x5fa   :  { %1163 = vst [vmem:[#allocation10 + $0x40] sm:$0xff] %v1147_v53  ;;  %v1148_v54 = vadd.f32 %v1979_v18, %v1132_v62 }
 0x5fb   :  { %1166 = vst [vmem:[#allocation10 + $0x58] sm:$0xff] %v1150_v63 }
 0x5fc   :  { %1164 = vst [vmem:[#allocation10 + $0x48] sm:$0xff] %v1148_v54  ;;  %v1513_v17 = vpop.f32.mrb[44].mxu1 }
 0x5fd   :  { %v1137_v8 = vadd.f32 %v1513_v17, %v1121_v55  ;;  %v1089_v36 = vpop.f32.mrb[45].mxu1 }
 0x5fe   :  { %v1135_v38 = vadd.f32 %v1119_v3, %v1089_v36  ;;  %v1514_v13 = vpop.f32.mrb[46].mxu1 }
 0x5ff   :  { %v1153_v11 = vadd.f32 %v1979_v18, %v1137_v8  ;;  %v1138_v14 = vadd.f32 %v1514_v13, %v1122_v7  ;;  %v1092_v15 = vpop.f32.mrb[47].mxu1 }
 0x600   :  { %v1151_v12 = vadd.f32 %v1979_v18, %v1135_v38  ;;  %v1136_v46 = vadd.f32 %v1120_v10, %v1092_v15 }
 0x601   :  { %1169 = vst [vmem:[#allocation10 + $0x70] sm:$0xff] %v1153_v11  ;;  %v1154_v22 = vadd.f32 %v1979_v18, %v1138_v14 }
 0x602   :  { %1167 = vst [vmem:[#allocation10 + $0x60] sm:$0xff] %v1151_v12  ;;  %v1152_v0 = vadd.f32 %v1979_v18, %v1136_v46 }
 0x603   :  { %1170 = vst [vmem:[#allocation10 + $0x78] sm:$0xff] %v1154_v22 }
 0x604   :  { %1168 = vst [vmem:[#allocation10 + $0x68] sm:$0xff] %v1152_v0 }
 0x605   :  { %1645 = shalt.err (!%p1642_p5)
}
 0x606   :  { %s1646_s20 = scalar_lea.hbm %s2115_s5, 2048 }
 0x607   :  { %p1647_p6 = scmp.ne.s32.totalorder %s2115_s5, %s1646_s20  ;;  %p1650_p7 = scmp.lt.u32.totalorder %s1646_s20, %s2115_s5 }
 0x609   :  { %p1652_p8 = pnand %p1650_p7, %p1647_p6 }
 0x60b   :  { %1655 = shalt.err (!%p1652_p8)
}
 0x60c   :  { %s1671_s26 = smov 128   ;;  %s1672_s27 = smov 8  }
 0x60d   :  { %1182 = dma.vmem_to_hbm [thread:$0]  %s1177_s1, 2048, %s2115_s5, [#allocation4], %s1671_s26, %s1671_s26, %s1672_s27  }
 0x60e   :  { %1662 = dma.done.wait [#allocation4], 2048  }
 0x60f   :  { %1663 = vsyncadd [#allocation4], 4294965248 }
 0x610   :  { %1186 = vsyncpa [#allocation3], 1 }
 0x611   :  { %1187 = vsyncpa [#allocation7], 1 }
 0x612   :  { %1188 = vsyncpa [#allocation4], 1 }
 0x613   :  { %1189 = vsyncpa [#allocation5], 1 }

</bundles_post_ra>
